<compile_context>
chip_gen: v6e
topology: v6e:2x2x1
jax: 0.10.0
libtpu: 0.0.40
codegen_flags: <defaults>
</compile_context>

<pallas_src>
import jax
import jax.numpy as jnp
from jax.experimental import pallas as pl
from jax.experimental.pallas import tpu as pltpu


# ----------------------------- config (synthetic, small) -----------------------------
DIM_AUD = 32             # cfg.dim_aud
NUM_VERTS = 16           # cfg.num_verts
MODEL_DEPTH = 3          # cfg.model_depth
MODEL_WIDTH = 32         # cfg.model_width
DIM_OUT = NUM_VERTS * 3  # 48
BATCH = 8

PAD_WIDTH = 128          # hidden width padded to one full lane width (and one MXU pass)
MAX_TM = 2048            # per-tile row cap for scaled batches (VMEM headroom everywhere)


def _round_up(x, m):
    return (x + m - 1) // m * m


def _choose_tm(n_rows):
    """Rows per grid step: whole batch in one tile when small; >=2 parallel tiles
    (v7x 2-TC sharding) once the batch exceeds MAX_TM."""
    tm = _round_up(n_rows, 16)          # bf16 sublane pack is (16, 128)
    if tm <= MAX_TM:
        return tm
    n_tiles = max(2, pl.cdiv(n_rows, MAX_TM))
    return _round_up(pl.cdiv(n_rows, n_tiles), 16)


# ----------------------------------- kernel ------------------------------------------
def mlp3_kernel(x_ref, w1_ref, b1_ref, w2_ref, b2_ref, w3_ref, b3_ref, o_ref):
    """Fused depth-3 MLP: bf16 operands on the MXU, f32 accumulation, direct 48-lane store."""
    x = x_ref[...].astype(jnp.bfloat16)                    # (tm, 32) f32 -> bf16 in-vreg (free VPU)
    h = jnp.dot(x, w1_ref[...], preferred_element_type=jnp.float32) + b1_ref[...]
    h = jnp.maximum(h, 0.0).astype(jnp.bfloat16)
    h = jnp.dot(h, w2_ref[...], preferred_element_type=jnp.float32) + b2_ref[...]
    h = jnp.maximum(h, 0.0).astype(jnp.bfloat16)
    o_ref[...] = (jnp.dot(h, w3_ref[...], preferred_element_type=jnp.float32)
                  + b3_ref[...]).astype(o_ref.dtype)       # (tm, 48) store, no post-slice needed


# ---------------------------------- wrapper ------------------------------------------
def audio_to_motion_forward(aud_feat, padded_params, out_dtype=jnp.float32):
    """aud_feat: (..., DIM_AUD) float32 -> (..., NUM_VERTS, 3).

    All leading dims (batch, stacked timesteps, ...) are flattened into one batch so a
    whole sequence of frames is processed by a single pallas_call.
    """
    (w1, b1, w2, b2, w3, b3) = padded_params
    lead = aud_feat.shape[:-1]
    x = aud_feat.reshape(-1, DIM_AUD)                      # metadata-only reshape
    n = x.shape[0]

    tm = _choose_tm(n)
    grid = (pl.cdiv(n, tm),)

    # Weights/biases: fully resident blocks, constant index_map (fetched once, never re-streamed).
    full = lambda arr: pl.BlockSpec(arr.shape, lambda i: (0, 0))

    pred = pl.pallas_call(
        mlp3_kernel,
        out_shape=jax.ShapeDtypeStruct((n, DIM_OUT), out_dtype),
        grid_spec=pltpu.PrefetchScalarGridSpec(
            num_scalar_prefetch=0,
            grid=grid,
            in_specs=[
                pl.BlockSpec((tm, DIM_AUD), lambda i: (i, 0)),   # raw unpadded x tile
                full(w1), full(b1),
                full(w2), full(b2),
                full(w3), full(b3),
            ],
            out_specs=pl.BlockSpec((tm, DIM_OUT), lambda i: (i, 0)),
        ),
        compiler_params=pltpu.CompilerParams(
            dimension_semantics=("parallel",)),
    )(x, w1, b1, w2, b2, w3, b3)

    # (N, 48) -> (..., 16, 3): contiguous, metadata-only reshape (no extra XLA pass).
    return pred.reshape(*lead, NUM_VERTS, 3)


# ------------------------------- parameter handling ----------------------------------
def init_params(key):
    """Logical-shape f32 parameters matching the PyTorch Linear stack,
    stored as (in, out) so the kernel computes y = x @ W + b."""
    k1, k2, k3, k4, k5, k6 = jax.random.split(key, 6)
    scale = 0.1
    w1 = scale * jax.random.normal(k1, (DIM_AUD, MODEL_WIDTH), jnp.float32)
    b1 = scale * jax.random.normal(k2, (MODEL_WIDTH,), jnp.float32)
    w2 = scale * jax.random.normal(k3, (MODEL_WIDTH, MODEL_WIDTH), jnp.float32)
    b2 = scale * jax.random.normal(k4, (MODEL_WIDTH,), jnp.float32)
    w3 = scale * jax.random.normal(k5, (MODEL_WIDTH, DIM_OUT), jnp.float32)
    b3 = scale * jax.random.normal(k6, (DIM_OUT,), jnp.float32)
    return (w1, b1, w2, b2, w3, b3)


def pad_params(params):
    """Zero-pad only the hidden (N/K) dims to 128 lanes; keep the input K=32 and the
    output N=48 unpadded.  Weights bf16, biases f32 (added to the f32 accumulator)."""
    (w1, b1, w2, b2, w3, b3) = params

    def pad_w(w, rows, cols):
        return jnp.pad(w, ((0, rows - w.shape[0]),
                           (0, cols - w.shape[1]))).astype(jnp.bfloat16)

    def pad_b(b, cols):
        return jnp.pad(b, (0, cols - b.shape[0])).reshape(1, cols).astype(jnp.float32)

    return (pad_w(w1, DIM_AUD, PAD_WIDTH),     # (32, 128): K unpadded, hidden padded
            pad_b(b1, PAD_WIDTH),              # (1, 128)
            pad_w(w2, PAD_WIDTH, PAD_WIDTH),   # (128, 128)
            pad_b(b2, PAD_WIDTH),              # (1, 128)
            pad_w(w3, PAD_WIDTH, DIM_OUT),     # (128, 48): K padded, output kept at 48
            b3.reshape(1, DIM_OUT).astype(jnp.float32))   # (1, 48)


# --------------------------------- references ----------------------------------------
def reference_forward_bf16(aud_feat, padded_params):
    """Same op/precision sequence as the kernel (bf16 operands, f32 accumulation)."""
    (w1, b1, w2, b2, w3, b3) = padded_params
    x = aud_feat.astype(jnp.bfloat16)
    h = jnp.maximum(jnp.dot(x, w1, preferred_element_type=jnp.float32) + b1, 0.0)
    h = h.astype(jnp.bfloat16)
    h = jnp.maximum(jnp.dot(h, w2, preferred_element_type=jnp.float32) + b2, 0.0)
    h = h.astype(jnp.bfloat16)
    pred = jnp.dot(h, w3, preferred_element_type=jnp.float32) + b3
    return pred.reshape(*aud_feat.shape[:-1], NUM_VERTS, 3)


def reference_forward_f32(aud_feat, params):
    """Exact f32 semantics of the original PyTorch module."""
    (w1, b1, w2, b2, w3, b3) = params
    h = jnp.maximum(aud_feat @ w1 + b1, 0.0)
    h = jnp.maximum(h @ w2 + b2, 0.0)
    pred = h @ w3 + b3
    return pred.reshape(*aud_feat.shape[:-1], NUM_VERTS, 3)


# ------------------------------------- main -------------------------------------------
if __name__ == "__main__":
    key = jax.random.PRNGKey(0)
    k_params, k_a, k_b, k_c = jax.random.split(key, 4)

    params = init_params(k_params)
    padded = pad_params(params)

    def check(aud):
        out = jax.block_until_ready(audio_to_motion_forward(aud, padded))
        assert out.shape == aud.shape[:-1] + (NUM_VERTS, 3), out.shape
        ref_bf16 = reference_forward_bf16(aud, padded)
        assert jnp.allclose(out, ref_bf16, atol=1e-4, rtol=1e-4), "mismatch vs bf16 reference"
        ref_f32 = reference_forward_f32(aud, params)
        assert jnp.allclose(out, ref_f32, atol=5e-2, rtol=5e-2), "mismatch vs f32 reference"
        return out

    # 1) Small batch (single grid step, whole batch in one tile).
    check(jax.random.normal(k_a, (BATCH, DIM_AUD), jnp.float32))

    # 2) Batch that is not a multiple of 16: exercises the partial-block masked writeback.
    check(jax.random.normal(k_b, (12, DIM_AUD), jnp.float32))

    # 3) Stacked frames (B, T, DIM_AUD): all timesteps amortized into ONE pallas_call.
    check(jax.random.normal(k_c, (2, 10, DIM_AUD), jnp.float32))

    print("KERNEL_OK")
</pallas_src>

<mosaic_0001>
module attributes {stable_mosaic.version = 11 : i64} {
  func.func @mlp3_kernel(%arg0: i32, %arg1: memref<16x32xf32, #tpu.memory_space<vmem>>, %arg2: memref<32x128xbf16, #tpu.memory_space<vmem>>, %arg3: memref<1x128xf32, #tpu.memory_space<vmem>>, %arg4: memref<128x128xbf16, #tpu.memory_space<vmem>>, %arg5: memref<1x128xf32, #tpu.memory_space<vmem>>, %arg6: memref<128x48xbf16, #tpu.memory_space<vmem>>, %arg7: memref<1x48xf32, #tpu.memory_space<vmem>>, %arg8: memref<16x48xf32, #tpu.memory_space<vmem>>) attributes {dimension_semantics = [#tpu.dimension_semantics<parallel>], iteration_bounds = array<i64: 1>, scalar_prefetch = 0 : i64, scratch_operands = 0 : i64, tpu.core_type = #tpu.core_type<tc>, window_params = [{transform_indices = @transform_0, window_bounds = array<i64: 16, 32>}, {pipeline_mode = #tpu.pipeline_mode<synchronous>, transform_indices = @transform_1, window_bounds = array<i64: 32, 128>}, {pipeline_mode = #tpu.pipeline_mode<synchronous>, transform_indices = @transform_2, window_bounds = array<i64: 1, 128>}, {pipeline_mode = #tpu.pipeline_mode<synchronous>, transform_indices = @transform_3, window_bounds = array<i64: 128, 128>}, {pipeline_mode = #tpu.pipeline_mode<synchronous>, transform_indices = @transform_4, window_bounds = array<i64: 1, 128>}, {pipeline_mode = #tpu.pipeline_mode<synchronous>, transform_indices = @transform_5, window_bounds = array<i64: 128, 48>}, {pipeline_mode = #tpu.pipeline_mode<synchronous>, transform_indices = @transform_6, window_bounds = array<i64: 1, 48>}, {transform_indices = @transform_7, window_bounds = array<i64: 16, 48>}]} {
    %c0 = arith.constant 0 : index
    %c0_0 = arith.constant 0 : index
    %0 = vector.load %arg1[%c0, %c0_0] : memref<16x32xf32, #tpu.memory_space<vmem>>, vector<16x32xf32>
    %1 = arith.truncf %0 : vector<16x32xf32> to vector<16x32xbf16>
    %c0_1 = arith.constant 0 : index
    %c0_2 = arith.constant 0 : index
    %2 = vector.load %arg2[%c0_1, %c0_2] : memref<32x128xbf16, #tpu.memory_space<vmem>>, vector<32x128xbf16>
    %cst = arith.constant dense<0.000000e+00> : vector<16x128xf32>
    %3 = tpu.matmul %1, %2, %cst {dimension_numbers = #tpu.dot_dimension_numbers<[1], [0], [0], [1], [0, 0, 1, 1], [], []>} : vector<16x32xbf16>, vector<32x128xbf16>, vector<16x128xf32> -> vector<16x128xf32>
    %c0_3 = arith.constant 0 : index
    %c0_4 = arith.constant 0 : index
    %4 = vector.load %arg3[%c0_3, %c0_4] : memref<1x128xf32, #tpu.memory_space<vmem>>, vector<1x128xf32>
    %5 = vector.broadcast %4 : vector<1x128xf32> to vector<16x128xf32>
    %6 = arith.addf %3, %5 : vector<16x128xf32>
    %cst_5 = arith.constant 0.000000e+00 : f32
    %7 = vector.broadcast %cst_5 : f32 to vector<16x128xf32>
    %8 = arith.maximumf %6, %7 : vector<16x128xf32>
    %9 = arith.truncf %8 : vector<16x128xf32> to vector<16x128xbf16>
    %c0_6 = arith.constant 0 : index
    %c0_7 = arith.constant 0 : index
    %10 = vector.load %arg4[%c0_6, %c0_7] : memref<128x128xbf16, #tpu.memory_space<vmem>>, vector<128x128xbf16>
    %cst_8 = arith.constant dense<0.000000e+00> : vector<16x128xf32>
    %11 = tpu.matmul %9, %10, %cst_8 {dimension_numbers = #tpu.dot_dimension_numbers<[1], [0], [0], [1], [0, 0, 1, 1], [], []>} : vector<16x128xbf16>, vector<128x128xbf16>, vector<16x128xf32> -> vector<16x128xf32>
    %c0_9 = arith.constant 0 : index
    %c0_10 = arith.constant 0 : index
    %12 = vector.load %arg5[%c0_9, %c0_10] : memref<1x128xf32, #tpu.memory_space<vmem>>, vector<1x128xf32>
    %13 = vector.broadcast %12 : vector<1x128xf32> to vector<16x128xf32>
    %14 = arith.addf %11, %13 : vector<16x128xf32>
    %cst_11 = arith.constant 0.000000e+00 : f32
    %15 = vector.broadcast %cst_11 : f32 to vector<16x128xf32>
    %16 = arith.maximumf %14, %15 : vector<16x128xf32>
    %17 = arith.truncf %16 : vector<16x128xf32> to vector<16x128xbf16>
    %c0_12 = arith.constant 0 : index
    %c0_13 = arith.constant 0 : index
    %18 = vector.load %arg6[%c0_12, %c0_13] : memref<128x48xbf16, #tpu.memory_space<vmem>>, vector<128x48xbf16>
    %cst_14 = arith.constant dense<0.000000e+00> : vector<16x48xf32>
    %19 = tpu.matmul %17, %18, %cst_14 {dimension_numbers = #tpu.dot_dimension_numbers<[1], [0], [0], [1], [0, 0, 1, 1], [], []>} : vector<16x128xbf16>, vector<128x48xbf16>, vector<16x48xf32> -> vector<16x48xf32>
    %c0_15 = arith.constant 0 : index
    %c0_16 = arith.constant 0 : index
    %20 = vector.load %arg7[%c0_15, %c0_16] : memref<1x48xf32, #tpu.memory_space<vmem>>, vector<1x48xf32>
    %21 = vector.broadcast %20 : vector<1x48xf32> to vector<16x48xf32>
    %22 = arith.addf %19, %21 : vector<16x48xf32>
    %c0_17 = arith.constant 0 : index
    %c0_18 = arith.constant 0 : index
    %23 = vector.load %arg8[%c0_17, %c0_18] : memref<16x48xf32, #tpu.memory_space<vmem>>, vector<16x48xf32>
    tpu.vector_store %arg8[%c0_17, %c0_18], %22 {strides = array<i32>} : memref<16x48xf32, #tpu.memory_space<vmem>>, vector<16x48xf32>,
    return
  }
  func.func @transform_0(%arg0: i32) -> (i32, i32) {
    %c0_i32 = arith.constant 0 : i32
    %c0_i32_0 = arith.constant 0 : i32
    return %arg0, %c0_i32 : i32, i32
  }
  func.func @transform_1(%arg0: i32) -> (i32, i32) {
    %c0_i32 = arith.constant 0 : i32
    %c0_i32_0 = arith.constant 0 : i32
    %c0_i32_1 = arith.constant 0 : i32
    return %c0_i32, %c0_i32_0 : i32, i32
  }
  func.func @transform_2(%arg0: i32) -> (i32, i32) {
    %c0_i32 = arith.constant 0 : i32
    %c0_i32_0 = arith.constant 0 : i32
    %c0_i32_1 = arith.constant 0 : i32
    return %c0_i32, %c0_i32_0 : i32, i32
  }
  func.func @transform_3(%arg0: i32) -> (i32, i32) {
    %c0_i32 = arith.constant 0 : i32
    %c0_i32_0 = arith.constant 0 : i32
    %c0_i32_1 = arith.constant 0 : i32
    return %c0_i32, %c0_i32_0 : i32, i32
  }
  func.func @transform_4(%arg0: i32) -> (i32, i32) {
    %c0_i32 = arith.constant 0 : i32
    %c0_i32_0 = arith.constant 0 : i32
    %c0_i32_1 = arith.constant 0 : i32
    return %c0_i32, %c0_i32_0 : i32, i32
  }
  func.func @transform_5(%arg0: i32) -> (i32, i32) {
    %c0_i32 = arith.constant 0 : i32
    %c0_i32_0 = arith.constant 0 : i32
    %c0_i32_1 = arith.constant 0 : i32
    return %c0_i32, %c0_i32_0 : i32, i32
  }
  func.func @transform_6(%arg0: i32) -> (i32, i32) {
    %c0_i32 = arith.constant 0 : i32
    %c0_i32_0 = arith.constant 0 : i32
    %c0_i32_1 = arith.constant 0 : i32
    return %c0_i32, %c0_i32_0 : i32, i32
  }
  func.func @transform_7(%arg0: i32) -> (i32, i32) {
    %c0_i32 = arith.constant 0 : i32
    %c0_i32_0 = arith.constant 0 : i32
    return %arg0, %c0_i32 : i32, i32
  }
}

</mosaic_0001>

<bundles_post_ra>
// kernel: tpu_custom_call.1
= control target key start
LH: loop header
LB: loop body
LE: loop exit
PB: predicated region body
PF: predicated region fallthrough
CT: control target
= control target key end

     0   :  { %12 = vsyncpa [#allocation3], 0  ;;  %v484_v1 = vmov 0.0   ;;  %vm485_vm0 = vmmov 0   ;;  %vm54_vm1 = vcmask 261120   ;;  %vm329_vm2 = vcmask 392192   ;;  %s622_s0 = inlined_call_operand.vmem [shape: f32[8,32], index: 0, kind: input, shape index: {}]   ;;  %s623_s1 = inlined_call_operand.vmem [shape: bf16[32,128], index: 1, kind: input, shape index: {}]   ;;  %s624_s2 = inlined_call_operand.vmem [shape: f32[1,128], index: 2, kind: input, shape index: {}]   ;;  %s625_s3 = inlined_call_operand.vmem [shape: bf16[128,128], index: 3, kind: input, shape index: {}]   ;;  %s626_s4 = inlined_call_operand.vmem [shape: f32[1,128], index: 4, kind: input, shape index: {}]   ;;  %s627_s5 = inlined_call_operand.vmem [shape: bf16[128,48], index: 5, kind: input, shape index: {}]   ;;  %s628_s6 = inlined_call_operand.vmem [shape: f32[1,48], index: 6, kind: input, shape index: {}]   ;;  %s629_s7 = inlined_call_operand.hbm [shape: f32[8,48], index: 7, kind: output, shape index: {}]  }
   0x1   :  { %v444_v0 = vld [vmem:[%s623_s1 + $0x8] sm:$0xff]   ;;  %391 = vmatprep.subr.bf16.mxu0 %v484_v1  ;;  %399 = vmatprep.subr.bf16.mxu1 %v484_v1  ;;  %v445_v2 = vld [vmem:[%s623_s1] sm:$0xff]   ;;  %v446_v5 = vld [vmem:[%s625_s3 + $0x38] sm:$0xff]  }
   0x2   :  { %392 = vmatpush3.bf16.msra.mxu0 %v444_v0  ;;  %v28_v3 = vld [vmem:[%s622_s0] sm:$0xff]  ;;  %v29_v4 = vld [vmem:[%s622_s0 + $0x8] sm:$0xff]  ;;  %395 = vmatprep.mubr.msk.bf16.mxu0 %vm485_vm0, %v484_v1  ;;  %v447_v7 = vld [vmem:[%s625_s3 + $0x30] sm:$0xff]  }
   0x3   :  { %393 = vmatprep.subr.bf16.mxu0 %v484_v1  ;;  %415 = vmatprep.mubr.msk.bf16.mxu1 %vm485_vm0, %v484_v1  ;;  %v30_v6 = vpack.c.bf16 %v29_v4, %v28_v3  ;;  %v448_v8 = vld [vmem:[%s625_s3 + $0x28] sm:$0xff]   ;;  %v449_v9 = vld [vmem:[%s625_s3 + $0x20] sm:$0xff]   ;;  %v450_v10 = vld [vmem:[%s625_s3 + $0x18] sm:$0xff]  }
   0x4   :  { %400 = vmatpush3.bf16.msra.mxu1 %v446_v5  ;;  %v451_v11 = vld [vmem:[%s625_s3 + $0x10] sm:$0xff]   ;;  %v452_v12 = vld [vmem:[%s625_s3 + $0x8] sm:$0xff]   ;;  %v453_v13 = vld [vmem:[%s625_s3] sm:$0xff]  }
   0x5   :  { %401 = vmatprep.subr.bf16.mxu1 %v484_v1  ;;  %v454_v14 = vld [vmem:[%s627_s5 + $0x38] sm:$0xff]   ;;  %v455_v15 = vld [vmem:[%s627_s5 + $0x30] sm:$0xff]   ;;  %v456_v16 = vld [vmem:[%s627_s5 + $0x28] sm:$0xff]  }
   0x6   :  { %394 = vmatpush3.bf16.msra.mxu0 %v445_v2  ;;  %v457_v17 = vld [vmem:[%s627_s5 + $0x20] sm:$0xff]   ;;  %v458_v18 = vld [vmem:[%s627_s5 + $0x18] sm:$0xff]   ;;  %v459_v29 = vld [vmem:[%s627_s5 + $0x10] sm:$0xff]  }
   0x7   :  { %419 = vmatprep.subr.bf16.mxu0 %v484_v1  ;;  %v348_v19 = vld [vmem:[%s624_s2] ss:$0 sm:$0xff]  ;;  %v460_v30 = vld [vmem:[%s627_s5 + $0x8] sm:$0xff]  }
   0x8   :  { %402 = vmatpush3.bf16.msra.mxu1 %v447_v7  ;;  %v461_v31 = vld [vmem:[%s627_s5] sm:$0xff]  }
   0x9   :  { %396 = vmatmul.mubr.msk.bf16.vlgmr.msra.gmra.mxu0 %vm54_vm1, %v30_v6  ;;  %403 = vmatprep.subr.bf16.mxu1 %v484_v1  ;;  %v352_v32 = vld [vmem:[%s626_s4] ss:$0 sm:$0xff] }
   0xa   :  { %435 = vmatprep.mubr.msk.bf16.mxu0 %vm485_vm0, %v484_v1  ;;  %420 = vmatpush3.bf16.msra.mxu0 %v454_v14  ;;  %v361_v42 = vld [vmem:[%s628_s6] ss:$0 sm:$0xff] }
   0xb   :  { %421 = vmatprep.subr.bf16.mxu0 %v484_v1 }
   0xc   :  { %404 = vmatpush3.bf16.msra.mxu1 %v448_v8 }
   0xd   :  { %405 = vmatprep.subr.bf16.mxu1 %v484_v1 }
   0xe   :  { %422 = vmatpush3.bf16.msra.mxu0 %v455_v15 }
   0xf   :  { %423 = vmatprep.subr.bf16.mxu0 %v484_v1 }
  0x10   :  { %406 = vmatpush3.bf16.msra.mxu1 %v449_v9 }
  0x11   :  { %407 = vmatprep.subr.bf16.mxu1 %v484_v1 }
  0x12   :  { %424 = vmatpush3.bf16.msra.mxu0 %v456_v16 }
  0x13   :  { %425 = vmatprep.subr.bf16.mxu0 %v484_v1 }
  0x14   :  { %408 = vmatpush3.bf16.msra.mxu1 %v450_v10 }
  0x15   :  { %409 = vmatprep.subr.bf16.mxu1 %v484_v1 }
  0x16   :  { %426 = vmatpush3.bf16.msra.mxu0 %v457_v17 }
  0x17   :  { %427 = vmatprep.subr.bf16.mxu0 %v484_v1 }
  0x18   :  { %410 = vmatpush3.bf16.msra.mxu1 %v451_v11 }
  0x19   :  { %411 = vmatprep.subr.bf16.mxu1 %v484_v1 }
  0x1a   :  { %428 = vmatpush3.bf16.msra.mxu0 %v458_v18 }
  0x1b   :  { %429 = vmatprep.subr.bf16.mxu0 %v484_v1 }
  0x1c   :  { %412 = vmatpush3.bf16.msra.mxu1 %v452_v12 }
  0x1d   :  { %413 = vmatprep.subr.bf16.mxu1 %v484_v1 }
  0x1e   :  { %430 = vmatpush3.bf16.msra.mxu0 %v459_v29 }
  0x1f   :  { %431 = vmatprep.subr.bf16.mxu0 %v484_v1 }
  0x20   :  { %414 = vmatpush3.bf16.msra.mxu1 %v453_v13 }
  0x22   :  { %432 = vmatpush3.bf16.msra.mxu0 %v460_v30 }
  0x23   :  { %433 = vmatprep.subr.bf16.mxu0 %v484_v1 }
  0x26   :  { %434 = vmatpush3.bf16.msra.mxu0 %v461_v31 }
  0xc9   :  { %v92_v20 = vpop.f32.mrf.mxu0 }
  0xca   :  { %v93_v22 = vadd.f32 %v348_v19, %v92_v20 }
  0xcb   :  { %v397_v21 = vpop.f32.mrf.mxu0 }
  0xcc   :  { %v99_v26 = vmax.f32 %v93_v22, 0.0 }
  0xcd   :  { %v95_v23 = vpop.f32.mrf.mxu0 }
  0xce   :  { %v96_v24 = vadd.f32 %v348_v19, %v95_v23 }
  0xcf   :  { %v398_v25 = vpop.f32.mrf.mxu0 }
  0xd0   :  { %v100_v27 = vmax.f32 %v96_v24, 0.0 }
  0xd2   :  { %v101_v28 = vpack.c.bf16 %v100_v27, %v99_v26 }
  0xd4   :  { %416 = vmatmul.mubr.bf16.vlgmr.msra.gmra.mxu1 %v101_v28 }
 0x194   :  { %v207_v33 = vpop.f32.mrf.mxu1 }
 0x195   :  { %v208_v35 = vadd.f32 %v352_v32, %v207_v33 }
 0x196   :  { %v417_v34 = vpop.f32.mrf.mxu1 }
 0x197   :  { %v214_v39 = vmax.f32 %v208_v35, 0.0 }
 0x198   :  { %v210_v36 = vpop.f32.mrf.mxu1 }
 0x199   :  { %v211_v37 = vadd.f32 %v352_v32, %v210_v36 }
 0x19a   :  { %v418_v38 = vpop.f32.mrf.mxu1 }
 0x19b   :  { %v215_v40 = vmax.f32 %v211_v37, 0.0 }
 0x19d   :  { %v216_v41 = vpack.c.bf16 %v215_v40, %v214_v39 }
 0x19f   :  { %436 = vmatmul.mubr.bf16.vlgmr.msra.gmra.mxu0 %v216_v41 }
 0x25f   :  { %v322_v43 = vpop.f32.mrf.mxu0 }
 0x260   :  { %v323_v44 = vadd.f32 %v361_v42, %v322_v43 }
 0x261   :  { %v437_v45 = vpop.f32.mrf.mxu0 }
 0x262   :  { %330 = vst.msk [vmem:[#allocation2] sm:$0xff] %vm329_vm2, %v323_v44 }
 0x263   :  { %v325_v46 = vpop.f32.mrf.mxu0 }
 0x264   :  { %v326_v47 = vadd.f32 %v361_v42, %v325_v46 }
 0x265   :  { %v438_v48 = vpop.f32.mrf.mxu0 }
 0x266   :  { %331 = vst.msk [vmem:[#allocation2 + $0x8] sm:$0xff] %vm329_vm2, %v326_v47 }
 0x267   :  { %336 = vsyncadd [#allocation3], 128  ;;  %s486_s4 = smov [#allocation2]  }
 0x268   :  { %s337_s5 = sshll.u32 %s486_s4, 4  ;;  %s338_s5 = int_to_ptr.vmem [resolvable:$true] %s337_s5 }
 0x269   :  { %s462_s18 = scalar_lea.vmem %s338_s5, 128  ;;  %s466_s19 = scalar_lea.vmem %s338_s5, 256 }
 0x26a   :  { %p463_p0 = scmp.ne.s32.totalorder %s338_s5, %s462_s18  ;;  %p467_p1 = scmp.lt.s32.totalorder %s338_s5, %s338_s5 }
 0x26b   :  { %p468_p2 = scmp.lt.s32.totalorder %s466_s19, %s462_s18 }
 0x26d   :  { %p469_p3 = por %p468_p2, %p467_p1 }
 0x26f   :  { %p470_p4 = pnand %p469_p3, %p463_p0 }
 0x271   :  { %473 = shalt.err (!%p470_p4)
}
 0x272   :  { %s487_s6 = smov 128   ;;  %s488_s20 = smov 8  }
 0x273   :  { %343 = dma.vmem_to_hbm [thread:$0]  %s338_s5, 128, %s629_s7, [#allocation3], %s487_s6, %s487_s6, %s488_s20  }
 0x274   :  { %482 = dma.done.wait [#allocation3], 256  }
 0x275   :  { %483 = vsyncadd [#allocation3], 4294967040 }
 0x276   :  { %347 = vsyncpa [#allocation3], 1 }

</bundles_post_ra>
